<compile_context>
chip_gen: v6e
topology: v6e:2x2x1
jax: 0.10.0
libtpu: 0.0.40
codegen_flags: <defaults>
</compile_context>

<pallas_src>
import functools

import jax
import jax.numpy as jnp
from jax.experimental import pallas as pl
from jax.experimental.pallas import tpu as pltpu

_LANE = 128      # lane width (last dim)
_SUBLANE = 8     # f32 sublane count (second-to-last dim)


def _round_up(v, m):
    return ((v + m - 1) // m) * m


def _pad2d(a, rows, cols):
    r, c = a.shape
    if r == rows and c == cols:
        return a
    return jnp.pad(a, ((0, rows - r), (0, cols - c)))


def _bf16_epilogue_ok():
    """Use a bf16 bias/ReLU epilogue only where the VPU has packed bf16 (v6e/v7x)."""
    try:
        kind = jax.devices()[0].device_kind.lower()
    except Exception:
        return False
    return not any(g in kind for g in ("v2", "v3", "v4", "v5"))


def _ffnn_stack_kernel(x_ref, *refs, num_layers, epilogue_dtype):
    """Fused [Linear (+ReLU)] * num_layers on one batch tile.

    refs = (w0, b0, w1, b1, ..., w_{L-1}, b_{L-1}, o_ref).
    Weights are bf16 (MXU, f32 accumulation); bias add + ReLU run in
    `epilogue_dtype`; inter-layer activations are carried as bf16 so the next
    dot needs no re-cast. The static Python loop unrolls; activations never
    leave VMEM/vregs between layers.
    """
    o_ref = refs[-1]
    a = x_ref[...]                                      # bf16 activation tile
    for l in range(num_layers):
        w_ref = refs[2 * l]
        b_ref = refs[2 * l + 1]
        y = jnp.dot(a, w_ref[...], preferred_element_type=jnp.float32)
        y = y.astype(epilogue_dtype) + b_ref[...]       # (1, F_out) broadcasts over rows
        if l < num_layers - 1:
            y = jnp.maximum(y, 0.0)                     # ReLU on all but the output layer
            a = y.astype(jnp.bfloat16)                  # next MXU operand
        else:
            a = y
    o_ref[...] = a.astype(o_ref.dtype)


def _choose_batch_tile(n, per_row_bytes, max_tile=512):
    """Pick (tm, n_p): sublane-multiple batch tile and padded batch rows.

    Bigger tiles amortize the ~0.35us per-grid-step overhead (measured ~85% of
    roofline at 512-wide tiles); >=2 grid steps keep both v7x TensorCores busy;
    tiles are chosen to limit zero-row padding waste for ragged batch sizes.
    """
    # Cap the tile so streamed x/out tiles + activation slabs stay <= ~16 MiB.
    vmem_cap = max(_SUBLANE,
                   ((16 << 20) // max(per_row_bytes, 1)) // _SUBLANE * _SUBLANE)
    max_tile = max(_SUBLANE, min(max_tile, vmem_cap))

    n8 = _round_up(n, _SUBLANE)
    if n8 <= max_tile:
        # Small/medium batch: split in two if there is enough work for both v7x cores.
        if n8 >= 2 * _LANE and n8 % (2 * _SUBLANE) == 0:
            return n8 // 2, n8
        return n8, n8

    best_tm, best_cost = _SUBLANE, None
    for tm in range(max_tile, _SUBLANE - 1, -_SUBLANE):
        n_p = _round_up(n8, tm)
        steps = n_p // tm
        cost = (n_p - n8) + 16 * steps      # padded zero rows + per-step overhead proxy
        if best_cost is None or cost < best_cost:
            best_tm, best_cost = tm, cost
    return best_tm, _round_up(n8, best_tm)


def init_ffnn_params(key, input_size, num_hidden_layers, hidden_size, out_size,
                     dtype=jnp.float32):
    """Deterministic init mirroring nn.Linear default U[-1/sqrt(fan_in), +1/sqrt(fan_in)].

    Weights stored transposed relative to PyTorch: (fan_in, fan_out); bias (1, fan_out).
    """
    params = []
    dims = [input_size] + [hidden_size] * (num_hidden_layers + 1) + [out_size]
    for fan_in, fan_out in zip(dims[:-1], dims[1:]):
        key, kw, kb = jax.random.split(key, 3)
        bound = 1.0 / (fan_in ** 0.5)
        w = jax.random.uniform(kw, (fan_in, fan_out), dtype, -bound, bound)
        b = jax.random.uniform(kb, (1, fan_out), dtype, -bound, bound)
        params.append((w, b))
    return params


def ffnn_forward(params, x_nchw, *, block_n=512):
    """Forward pass of FFNN: flatten -> fused [Linear+ReLU]* -> Linear, one pallas_call."""
    n = x_nchw.shape[0]
    x = x_nchw.reshape(n, -1)                         # input_image.view(size(0), -1)
    num_layers = len(params)

    use_bf16_epi = _bf16_epilogue_ok()
    epilogue_dtype = jnp.bfloat16 if use_bf16_epi else jnp.float32
    bias_itemsize = 2 if use_bf16_epi else 4

    # Lane-dense padding targets.
    feat = [x.shape[1]] + [w.shape[1] for (w, _) in params]
    feat_p = [_round_up(f, _LANE) for f in feat]

    # Per-batch-row streaming/scratch bytes (x tile bf16 x2 bufs, out tile f32 x2 bufs,
    # two live f32 activation slabs worst-case) -> used to bound the batch tile.
    per_row = (2 * feat_p[0] * 2 + 2 * feat_p[-1] * 4 + 2 * max(feat_p) * 4)
    tm, n_p = _choose_batch_tile(n, per_row, max_tile=block_n)

    # Pad inputs/params; x and weights -> bf16 for the MXU, bias in epilogue dtype.
    x_p = _pad2d(x.astype(jnp.float32), n_p, feat_p[0]).astype(jnp.bfloat16)
    flat_inputs = [x_p]
    in_specs = [pl.BlockSpec((tm, feat_p[0]), lambda i: (i, 0))]
    for li, (w, b) in enumerate(params):
        w_p = _pad2d(w, feat_p[li], feat_p[li + 1]).astype(jnp.bfloat16)
        b_p = _pad2d(b, 1, feat_p[li + 1]).astype(epilogue_dtype)
        flat_inputs += [w_p, b_p]
        # Constant index_map -> VMEM-resident across batch-grid steps; Buffered(1)
        # drops the pointless double buffer and halves the resident weight VMEM.
        in_specs += [
            pl.BlockSpec((feat_p[li], feat_p[li + 1]), lambda i: (0, 0),
                         pipeline_mode=pl.Buffered(1)),
            pl.BlockSpec((1, feat_p[li + 1]), lambda i: (0, 0),
                         pipeline_mode=pl.Buffered(1)),
        ]

    # Derived VMEM footprint: single-buffered weights/bias + double-buffered x/out
    # tiles + activation slabs + headroom (never below the 16 MiB default).
    weight_bytes = sum(feat_p[i] * feat_p[i + 1] for i in range(num_layers)) * 2
    bias_bytes = sum(feat_p[i + 1] for i in range(num_layers)) * bias_itemsize
    footprint = weight_bytes + bias_bytes + tm * per_row
    vmem_limit = min(max(int(footprint * 1.25) + (2 << 20), 16 << 20), 100 << 20)
    # TODO(synk): if the bf16 weight stack ever approaches ~48 MiB (v7x has only
    # 64 MiB VMEM per TensorCore), split the layer stack across two pallas_calls
    # or tile the widest layer's fan-out axis instead of keeping it all resident.

    matmul_flops = 2 * n_p * sum(feat_p[i] * feat_p[i + 1] for i in range(num_layers))
    bytes_accessed = (n_p * feat_p[0] * 2 + weight_bytes + bias_bytes
                      + n_p * feat_p[-1] * 4)

    out_p = pl.pallas_call(
        functools.partial(_ffnn_stack_kernel, num_layers=num_layers,
                          epilogue_dtype=epilogue_dtype),
        out_shape=jax.ShapeDtypeStruct((n_p, feat_p[-1]), jnp.float32),
        grid=(n_p // tm,),
        in_specs=in_specs,
        out_specs=pl.BlockSpec((tm, feat_p[-1]), lambda i: (i, 0)),
        compiler_params=pltpu.CompilerParams(
            dimension_semantics=("parallel",),      # batch axis: no carried reduction
            vmem_limit_bytes=vmem_limit,
        ),
        cost_estimate=pl.CostEstimate(flops=matmul_flops, transcendentals=0,
                                      bytes_accessed=bytes_accessed),
    )(*flat_inputs)

    # Strip batch/feature padding to recover the true logits.
    return out_p[:n, :feat[-1]]


def _kernel_math_reference(params, x_nchw, epilogue_dtype):
    """Pure-JAX reference with the exact dtype policy of the kernel."""
    a = x_nchw.reshape(x_nchw.shape[0], -1).astype(jnp.bfloat16)
    num_layers = len(params)
    for l, (w, b) in enumerate(params):
        y = jnp.dot(a, w.astype(jnp.bfloat16), preferred_element_type=jnp.float32)
        y = y.astype(epilogue_dtype) + b.astype(epilogue_dtype)
        if l < num_layers - 1:
            y = jnp.maximum(y, 0.0)
            a = y.astype(jnp.bfloat16)
        else:
            a = y
    return a.astype(jnp.float32)


def _f32_reference(params, x_nchw):
    """Exact-f32 equivalent of the PyTorch FFNN forward."""
    a = x_nchw.reshape(x_nchw.shape[0], -1)
    num_layers = len(params)
    for l, (w, b) in enumerate(params):
        y = a @ w + b
        a = jnp.maximum(y, 0.0) if l < num_layers - 1 else y
    return a


if __name__ == "__main__":
    # Small shapes consistent with the module: batch=2, image (1,16,16) -> 256 feats,
    # 2 hidden layers of width 32, 10 output classes.
    batch, c, h, w_ = 2, 1, 16, 16
    input_size = c * h * w_
    num_hidden_layers = 2
    hidden_size = 32
    out_size = 10

    key = jax.random.PRNGKey(0)
    key, kx = jax.random.split(key)
    x = jax.random.normal(kx, (batch, c, h, w_), dtype=jnp.float32)

    params = init_ffnn_params(key, input_size, num_hidden_layers, hidden_size,
                              out_size)

    fwd = jax.jit(ffnn_forward)
    out = jax.block_until_ready(fwd(params, x))
    assert out.shape == (batch, out_size), out.shape

    # Tight check vs a reference using the identical bf16/epilogue dtype policy.
    epi = jnp.bfloat16 if _bf16_epilogue_ok() else jnp.float32
    ref_same = _kernel_math_reference(params, x, epi)
    assert jnp.allclose(out, ref_same, atol=2e-3, rtol=2e-3), float(
        jnp.max(jnp.abs(out - ref_same)))

    # Loose semantic check vs the exact-f32 PyTorch-equivalent forward
    # (bf16 MXU inputs cost ~1e-2-scale relative precision through the stack).
    ref_f32 = _f32_reference(params, x)
    assert jnp.allclose(out, ref_f32, atol=5e-2, rtol=5e-2), float(
        jnp.max(jnp.abs(out - ref_f32)))

    print("KERNEL_OK")
</pallas_src>

<mosaic_0001>
module attributes {stable_mosaic.version = 11 : i64} {
  func.func @_ffnn_stack_kernel(%arg0: i32, %arg1: memref<8x256xbf16, #tpu.memory_space<vmem>>, %arg2: memref<256x128xbf16, #tpu.memory_space<vmem>>, %arg3: memref<1x128xbf16, #tpu.memory_space<vmem>>, %arg4: memref<128x128xbf16, #tpu.memory_space<vmem>>, %arg5: memref<1x128xbf16, #tpu.memory_space<vmem>>, %arg6: memref<128x128xbf16, #tpu.memory_space<vmem>>, %arg7: memref<1x128xbf16, #tpu.memory_space<vmem>>, %arg8: memref<128x128xbf16, #tpu.memory_space<vmem>>, %arg9: memref<1x128xbf16, #tpu.memory_space<vmem>>, %arg10: memref<8x128xf32, #tpu.memory_space<vmem>>) attributes {dimension_semantics = [#tpu.dimension_semantics<parallel>], iteration_bounds = array<i64: 1>, scalar_prefetch = 0 : i64, scratch_operands = 0 : i64, tpu.core_type = #tpu.core_type<tc>, window_params = [{transform_indices = @transform_0, window_bounds = array<i64: 8, 256>}, {pipeline_mode = #tpu.pipeline_mode<synchronous>, transform_indices = @transform_1, window_bounds = array<i64: 256, 128>}, {pipeline_mode = #tpu.pipeline_mode<synchronous>, transform_indices = @transform_2, window_bounds = array<i64: 1, 128>}, {pipeline_mode = #tpu.pipeline_mode<synchronous>, transform_indices = @transform_3, window_bounds = array<i64: 128, 128>}, {pipeline_mode = #tpu.pipeline_mode<synchronous>, transform_indices = @transform_4, window_bounds = array<i64: 1, 128>}, {pipeline_mode = #tpu.pipeline_mode<synchronous>, transform_indices = @transform_5, window_bounds = array<i64: 128, 128>}, {pipeline_mode = #tpu.pipeline_mode<synchronous>, transform_indices = @transform_6, window_bounds = array<i64: 1, 128>}, {pipeline_mode = #tpu.pipeline_mode<synchronous>, transform_indices = @transform_7, window_bounds = array<i64: 128, 128>}, {pipeline_mode = #tpu.pipeline_mode<synchronous>, transform_indices = @transform_8, window_bounds = array<i64: 1, 128>}, {transform_indices = @transform_9, window_bounds = array<i64: 8, 128>}]} {
    %c0 = arith.constant 0 : index
    %c0_0 = arith.constant 0 : index
    %0 = vector.load %arg1[%c0, %c0_0] : memref<8x256xbf16, #tpu.memory_space<vmem>>, vector<8x256xbf16>
    %c0_1 = arith.constant 0 : index
    %c0_2 = arith.constant 0 : index
    %1 = vector.load %arg2[%c0_1, %c0_2] : memref<256x128xbf16, #tpu.memory_space<vmem>>, vector<256x128xbf16>
    %cst = arith.constant dense<0.000000e+00> : vector<8x128xf32>
    %2 = tpu.matmul %0, %1, %cst {dimension_numbers = #tpu.dot_dimension_numbers<[1], [0], [0], [1], [0, 0, 1, 1], [], []>} : vector<8x256xbf16>, vector<256x128xbf16>, vector<8x128xf32> -> vector<8x128xf32>
    %3 = arith.truncf %2 : vector<8x128xf32> to vector<8x128xbf16>
    %c0_3 = arith.constant 0 : index
    %c0_4 = arith.constant 0 : index
    %4 = vector.load %arg3[%c0_3, %c0_4] : memref<1x128xbf16, #tpu.memory_space<vmem>>, vector<1x128xbf16>
    %5 = vector.broadcast %4 : vector<1x128xbf16> to vector<8x128xbf16>
    %6 = arith.addf %3, %5 : vector<8x128xbf16>
    %cst_5 = arith.constant 0.000000e+00 : bf16
    %7 = vector.broadcast %cst_5 : bf16 to vector<8x128xbf16>
    %8 = arith.maximumf %6, %7 : vector<8x128xbf16>
    %c0_6 = arith.constant 0 : index
    %c0_7 = arith.constant 0 : index
    %9 = vector.load %arg4[%c0_6, %c0_7] : memref<128x128xbf16, #tpu.memory_space<vmem>>, vector<128x128xbf16>
    %cst_8 = arith.constant dense<0.000000e+00> : vector<8x128xf32>
    %10 = tpu.matmul %8, %9, %cst_8 {dimension_numbers = #tpu.dot_dimension_numbers<[1], [0], [0], [1], [0, 0, 1, 1], [], []>} : vector<8x128xbf16>, vector<128x128xbf16>, vector<8x128xf32> -> vector<8x128xf32>
    %11 = arith.truncf %10 : vector<8x128xf32> to vector<8x128xbf16>
    %c0_9 = arith.constant 0 : index
    %c0_10 = arith.constant 0 : index
    %12 = vector.load %arg5[%c0_9, %c0_10] : memref<1x128xbf16, #tpu.memory_space<vmem>>, vector<1x128xbf16>
    %13 = vector.broadcast %12 : vector<1x128xbf16> to vector<8x128xbf16>
    %14 = arith.addf %11, %13 : vector<8x128xbf16>
    %cst_11 = arith.constant 0.000000e+00 : bf16
    %15 = vector.broadcast %cst_11 : bf16 to vector<8x128xbf16>
    %16 = arith.maximumf %14, %15 : vector<8x128xbf16>
    %c0_12 = arith.constant 0 : index
    %c0_13 = arith.constant 0 : index
    %17 = vector.load %arg6[%c0_12, %c0_13] : memref<128x128xbf16, #tpu.memory_space<vmem>>, vector<128x128xbf16>
    %cst_14 = arith.constant dense<0.000000e+00> : vector<8x128xf32>
    %18 = tpu.matmul %16, %17, %cst_14 {dimension_numbers = #tpu.dot_dimension_numbers<[1], [0], [0], [1], [0, 0, 1, 1], [], []>} : vector<8x128xbf16>, vector<128x128xbf16>, vector<8x128xf32> -> vector<8x128xf32>
    %19 = arith.truncf %18 : vector<8x128xf32> to vector<8x128xbf16>
    %c0_15 = arith.constant 0 : index
    %c0_16 = arith.constant 0 : index
    %20 = vector.load %arg7[%c0_15, %c0_16] : memref<1x128xbf16, #tpu.memory_space<vmem>>, vector<1x128xbf16>
    %21 = vector.broadcast %20 : vector<1x128xbf16> to vector<8x128xbf16>
    %22 = arith.addf %19, %21 : vector<8x128xbf16>
    %cst_17 = arith.constant 0.000000e+00 : bf16
    %23 = vector.broadcast %cst_17 : bf16 to vector<8x128xbf16>
    %24 = arith.maximumf %22, %23 : vector<8x128xbf16>
    %c0_18 = arith.constant 0 : index
    %c0_19 = arith.constant 0 : index
    %25 = vector.load %arg8[%c0_18, %c0_19] : memref<128x128xbf16, #tpu.memory_space<vmem>>, vector<128x128xbf16>
    %cst_20 = arith.constant dense<0.000000e+00> : vector<8x128xf32>
    %26 = tpu.matmul %24, %25, %cst_20 {dimension_numbers = #tpu.dot_dimension_numbers<[1], [0], [0], [1], [0, 0, 1, 1], [], []>} : vector<8x128xbf16>, vector<128x128xbf16>, vector<8x128xf32> -> vector<8x128xf32>
    %27 = arith.truncf %26 : vector<8x128xf32> to vector<8x128xbf16>
    %c0_21 = arith.constant 0 : index
    %c0_22 = arith.constant 0 : index
    %28 = vector.load %arg9[%c0_21, %c0_22] : memref<1x128xbf16, #tpu.memory_space<vmem>>, vector<1x128xbf16>
    %29 = vector.broadcast %28 : vector<1x128xbf16> to vector<8x128xbf16>
    %30 = arith.addf %27, %29 : vector<8x128xbf16>
    %31 = arith.extf %30 : vector<8x128xbf16> to vector<8x128xf32>
    %c0_23 = arith.constant 0 : index
    %c0_24 = arith.constant 0 : index
    %32 = vector.load %arg10[%c0_23, %c0_24] : memref<8x128xf32, #tpu.memory_space<vmem>>, vector<8x128xf32>
    tpu.vector_store %arg10[%c0_23, %c0_24], %31 {strides = array<i32>} : memref<8x128xf32, #tpu.memory_space<vmem>>, vector<8x128xf32>,
    return
  }
  func.func @transform_0(%arg0: i32) -> (i32, i32) {
    %c0_i32 = arith.constant 0 : i32
    %c0_i32_0 = arith.constant 0 : i32
    return %arg0, %c0_i32 : i32, i32
  }
  func.func @transform_1(%arg0: i32) -> (i32, i32) {
    %c0_i32 = arith.constant 0 : i32
    %c0_i32_0 = arith.constant 0 : i32
    %c0_i32_1 = arith.constant 0 : i32
    return %c0_i32, %c0_i32_0 : i32, i32
  }
  func.func @transform_2(%arg0: i32) -> (i32, i32) {
    %c0_i32 = arith.constant 0 : i32
    %c0_i32_0 = arith.constant 0 : i32
    %c0_i32_1 = arith.constant 0 : i32
    return %c0_i32, %c0_i32_0 : i32, i32
  }
  func.func @transform_3(%arg0: i32) -> (i32, i32) {
    %c0_i32 = arith.constant 0 : i32
    %c0_i32_0 = arith.constant 0 : i32
    %c0_i32_1 = arith.constant 0 : i32
    return %c0_i32, %c0_i32_0 : i32, i32
  }
  func.func @transform_4(%arg0: i32) -> (i32, i32) {
    %c0_i32 = arith.constant 0 : i32
    %c0_i32_0 = arith.constant 0 : i32
    %c0_i32_1 = arith.constant 0 : i32
    return %c0_i32, %c0_i32_0 : i32, i32
  }
  func.func @transform_5(%arg0: i32) -> (i32, i32) {
    %c0_i32 = arith.constant 0 : i32
    %c0_i32_0 = arith.constant 0 : i32
    %c0_i32_1 = arith.constant 0 : i32
    return %c0_i32, %c0_i32_0 : i32, i32
  }
  func.func @transform_6(%arg0: i32) -> (i32, i32) {
    %c0_i32 = arith.constant 0 : i32
    %c0_i32_0 = arith.constant 0 : i32
    %c0_i32_1 = arith.constant 0 : i32
    return %c0_i32, %c0_i32_0 : i32, i32
  }
  func.func @transform_7(%arg0: i32) -> (i32, i32) {
    %c0_i32 = arith.constant 0 : i32
    %c0_i32_0 = arith.constant 0 : i32
    %c0_i32_1 = arith.constant 0 : i32
    return %c0_i32, %c0_i32_0 : i32, i32
  }
  func.func @transform_8(%arg0: i32) -> (i32, i32) {
    %c0_i32 = arith.constant 0 : i32
    %c0_i32_0 = arith.constant 0 : i32
    %c0_i32_1 = arith.constant 0 : i32
    return %c0_i32, %c0_i32_0 : i32, i32
  }
  func.func @transform_9(%arg0: i32) -> (i32, i32) {
    %c0_i32 = arith.constant 0 : i32
    %c0_i32_0 = arith.constant 0 : i32
    return %arg0, %c0_i32 : i32, i32
  }
}

</mosaic_0001>

<bundles_post_ra>
// kernel: ffnn_forward.1
= control target key start
LH: loop header
LB: loop body
LE: loop exit
PB: predicated region body
PF: predicated region fallthrough
CT: control target
= control target key end

     0   :  { %v766_v1 = vmov 0.0   ;;  %vm767_vm0 = vmmov 0   ;;  %v214_v34 = vlaneseq  ;;  %v768_v47 = vmov 0   ;;  %s993_s1 = inlined_call_operand.vmem [shape: bf16[256,128], index: 1, kind: input, shape index: {}]   ;;  %s994_s0 = inlined_call_operand.vmem [shape: bf16[8,256], index: 0, kind: input, shape index: {}]   ;;  %s995_s3 = inlined_call_operand.vmem [shape: bf16[128,128], index: 3, kind: input, shape index: {}]   ;;  %s996_s5 = inlined_call_operand.vmem [shape: bf16[128,128], index: 5, kind: input, shape index: {}]   ;;  %s997_s2 = inlined_call_operand.vmem [shape: bf16[1,128], index: 2, kind: input, shape index: {}]   ;;  %s998_s7 = inlined_call_operand.vmem [shape: bf16[128,128], index: 7, kind: input, shape index: {}]   ;;  %s999_s4 = inlined_call_operand.vmem [shape: bf16[1,128], index: 4, kind: input, shape index: {}]   ;;  %s1000_s6 = inlined_call_operand.vmem [shape: bf16[1,128], index: 6, kind: input, shape index: {}]   ;;  %s1001_s8 = inlined_call_operand.vmem [shape: bf16[1,128], index: 8, kind: input, shape index: {}]   ;;  %s1002_s9 = inlined_call_operand.vmem [shape: f32[8,128], index: 9, kind: output, shape index: {}]  }
   0x1   :  { %v724_v0 = vld [vmem:[%s993_s1 + $0x78] sm:$0xff]   ;;  %661 = vmatprep.subr.bf16.mxu1 %v766_v1  ;;  %v726_v3 = vld [vmem:[%s993_s1 + $0x70] sm:$0xff]   ;;  %v728_v5 = vld [vmem:[%s993_s1 + $0x68] sm:$0xff]   ;;  %677 = vmatprep.mubr.msk.bf16.mxu1 %vm767_vm0, %v766_v1 }
   0x2   :  { %v725_v2 = vld [vmem:[%s993_s1 + $0x38] sm:$0xff]   ;;  %612 = vmatprep.subr.bf16.mxu0 %v724_v0  ;;  %v727_v4 = vld [vmem:[%s993_s1 + $0x30] sm:$0xff]   ;;  %v729_v6 = vld [vmem:[%s993_s1 + $0x28] sm:$0xff]   ;;  %v215_v35 = vshrl.u32 %v214_v34, 7 }
   0x3   :  { %613 = vmatpush3.bf16.msra.mxu0 %v725_v2  ;;  %v730_v7 = vld [vmem:[%s993_s1 + $0x60] sm:$0xff]   ;;  %v732_v9 = vld [vmem:[%s993_s1 + $0x58] sm:$0xff]   ;;  %v734_v11 = vld [vmem:[%s993_s1 + $0x50] sm:$0xff]  }
   0x4   :  { %614 = vmatprep.subr.bf16.mxu0 %v726_v3  ;;  %v731_v8 = vld [vmem:[%s993_s1 + $0x20] sm:$0xff]   ;;  %v733_v10 = vld [vmem:[%s993_s1 + $0x18] sm:$0xff]   ;;  %v735_v15 = vld [vmem:[%s993_s1 + $0x10] sm:$0xff]   ;;  %v935_v38 = vsub.s32 0, %v215_v35 }
   0x5   :  { %v33_v12 = vld [vmem:[%s994_s0] sm:$0xff]  ;;  %v742_v14 = vld [vmem:[%s995_s3 + $0x38] sm:$0xff]   ;;  %v736_v16 = vld [vmem:[%s993_s1 + $0x48] sm:$0xff]  }
   0x6   :  { %v571_v13 = vcombine.high %v33_v12, %v33_v12  ;;  %662 = vmatpush3.bf16.msra.mxu1 %v742_v14  ;;  %v743_v17 = vld [vmem:[%s995_s3 + $0x30] sm:$0xff]   ;;  %v737_v18 = vld [vmem:[%s993_s1 + $0x8] sm:$0xff]   ;;  %v738_v19 = vld [vmem:[%s993_s1 + $0x40] sm:$0xff]   ;;  %v570_v23 = vcombine.low %v33_v12, %v33_v12 }
   0x7   :  { %615 = vmatpush3.bf16.msra.mxu0 %v727_v4  ;;  %663 = vmatprep.subr.bf16.mxu1 %v766_v1  ;;  %v744_v20 = vld [vmem:[%s995_s3 + $0x28] sm:$0xff]   ;;  %v739_v21 = vld [vmem:[%s993_s1] sm:$0xff]   ;;  %v746_v24 = vld [vmem:[%s995_s3 + $0x18] sm:$0xff]  }
   0x8   :  { %616 = vmatprep.subr.bf16.mxu0 %v728_v5  ;;  %201 = vmatprep.mubr.bf16.mxu0 %v571_v13  ;;  %v745_v22 = vld [vmem:[%s995_s3 + $0x20] sm:$0xff]   ;;  %v747_v25 = vld [vmem:[%s995_s3 + $0x10] sm:$0xff]   ;;  %v748_v26 = vld [vmem:[%s995_s3 + $0x8] sm:$0xff]  }
   0x9   :  { %v749_v27 = vld [vmem:[%s995_s3] sm:$0xff]   ;;  %v750_v28 = vld [vmem:[%s996_s5 + $0x38] sm:$0xff]   ;;  %v751_v29 = vld [vmem:[%s996_s5 + $0x30] sm:$0xff]  }
   0xa   :  { %664 = vmatpush3.bf16.msra.mxu1 %v743_v17  ;;  %v752_v30 = vld [vmem:[%s996_s5 + $0x28] sm:$0xff]   ;;  %v753_v31 = vld [vmem:[%s996_s5 + $0x20] sm:$0xff]   ;;  %v754_v32 = vld [vmem:[%s996_s5 + $0x18] sm:$0xff]  }
   0xb   :  { %617 = vmatpush3.bf16.msra.mxu0 %v729_v6  ;;  %665 = vmatprep.subr.bf16.mxu1 %v766_v1  ;;  %v755_v33 = vld [vmem:[%s996_s5 + $0x10] sm:$0xff]   ;;  %v210_v36 = vld [vmem:[%s997_s2] sm:$0x1]  ;;  %v756_v49 = vld [vmem:[%s996_s5 + $0x8] sm:$0xff]  }
   0xc   :  { %618 = vmatprep.subr.bf16.mxu0 %v730_v7  ;;  %v212_v37 = vpack.i.b16 %v210_v36, %v210_v36  ;;  %v757_v50 = vld [vmem:[%s996_s5] sm:$0xff]   ;;  %v758_v51 = vld [vmem:[%s998_s7 + $0x38] sm:$0xff]   ;;  %v759_v52 = vld [vmem:[%s998_s7 + $0x30] sm:$0xff]  }
   0xd   :  { %v760_v53 = vld [vmem:[%s998_s7 + $0x28] sm:$0xff]   ;;  %v761_v54 = vld [vmem:[%s998_s7 + $0x20] sm:$0xff]   ;;  %v762_v55 = vld [vmem:[%s998_s7 + $0x18] sm:$0xff]  }
   0xe   :  { %666 = vmatpush3.bf16.msra.mxu1 %v744_v20  ;;  %v217_v42 = vrot.slane %v212_v37, %v935_v38  ;;  %v763_v56 = vld [vmem:[%s998_s7 + $0x10] sm:$0xff]   ;;  %v325_v57 = vld [vmem:[%s999_s4] sm:$0x1]  ;;  %v764_v4 = vld [vmem:[%s998_s7 + $0x8] sm:$0xff]  }
   0xf   :  { %619 = vmatpush3.bf16.msra.mxu0 %v731_v8  ;;  %667 = vmatprep.subr.bf16.mxu1 %v766_v1  ;;  %v327_v58 = vpack.i.b16 %v325_v57, %v325_v57  ;;  %v765_v5 = vld [vmem:[%s998_s7] sm:$0xff]  }
  0x10   :  { %620 = vmatprep.subr.bf16.mxu0 %v732_v9  ;;  %v440_v6 = vld [vmem:[%s1000_s6] sm:$0x1] }
  0x11   :  { %v332_v59 = vrot.slane %v327_v58, %v935_v38  ;;  %v442_v7 = vpack.i.b16 %v440_v6, %v440_v6 }
  0x12   :  { %668 = vmatpush3.bf16.msra.mxu1 %v745_v22 }
  0x13   :  { %621 = vmatpush3.bf16.msra.mxu0 %v733_v10  ;;  %669 = vmatprep.subr.bf16.mxu1 %v766_v1  ;;  %v447_v8 = vrot.slane %v442_v7, %v935_v38 }
  0x14   :  { %622 = vmatprep.subr.bf16.mxu0 %v734_v11 }
  0x16   :  { %670 = vmatpush3.bf16.msra.mxu1 %v746_v24 }
  0x17   :  { %623 = vmatpush3.bf16.msra.mxu0 %v735_v15  ;;  %671 = vmatprep.subr.bf16.mxu1 %v766_v1 }
  0x18   :  { %624 = vmatprep.subr.bf16.mxu0 %v736_v16 }
  0x1a   :  { %672 = vmatpush3.bf16.msra.mxu1 %v747_v25 }
  0x1b   :  { %625 = vmatpush3.bf16.msra.mxu0 %v737_v18  ;;  %673 = vmatprep.subr.bf16.mxu1 %v766_v1 }
  0x1c   :  { %626 = vmatprep.subr.bf16.mxu0 %v738_v19 }
  0x1e   :  { %674 = vmatpush3.bf16.msra.mxu1 %v748_v26 }
  0x1f   :  { %627 = vmatpush3.bf16.msra.mxu0 %v739_v21  ;;  %675 = vmatprep.subr.bf16.mxu1 %v766_v1 }
  0x20   :  { %681 = vmatprep.subr.bf16.mxu0 %v766_v1 }
  0x22   :  { %202 = vmatmul.mubr.bf16.vlgmr.msra.gmra.mxu0 %v570_v23  ;;  %676 = vmatpush3.bf16.msra.mxu1 %v749_v27 }
  0x23   :  { %697 = vmatprep.mubr.msk.bf16.mxu0 %vm767_vm0, %v766_v1  ;;  %701 = vmatprep.subr.bf16.mxu1 %v766_v1 }
  0x24   :  { %682 = vmatpush3.bf16.msra.mxu0 %v750_v28 }
  0x25   :  { %683 = vmatprep.subr.bf16.mxu0 %v766_v1 }
  0x28   :  { %684 = vmatpush3.bf16.msra.mxu0 %v751_v29 }
  0x29   :  { %685 = vmatprep.subr.bf16.mxu0 %v766_v1 }
  0x2c   :  { %686 = vmatpush3.bf16.msra.mxu0 %v752_v30 }
  0x2d   :  { %687 = vmatprep.subr.bf16.mxu0 %v766_v1 }
  0x30   :  { %688 = vmatpush3.bf16.msra.mxu0 %v753_v31 }
  0x31   :  { %689 = vmatprep.subr.bf16.mxu0 %v766_v1 }
  0x34   :  { %690 = vmatpush3.bf16.msra.mxu0 %v754_v32 }
  0x35   :  { %691 = vmatprep.subr.bf16.mxu0 %v766_v1 }
  0x38   :  { %692 = vmatpush3.bf16.msra.mxu0 %v755_v33 }
  0x39   :  { %693 = vmatprep.subr.bf16.mxu0 %v766_v1 }
  0x3c   :  { %694 = vmatpush3.bf16.msra.mxu0 %v756_v49 }
  0x3d   :  { %695 = vmatprep.subr.bf16.mxu0 %v766_v1 }
  0x40   :  { %696 = vmatpush3.bf16.msra.mxu0 %v757_v50 }
  0xe2   :  { %v628_v39 = vpop.f32.mrf.mxu0 }
  0xe4   :  { %v629_v40 = vpop.f32.mrf.mxu0 }
  0xe5   :  { %v630_v41 = vadd.f32 %v629_v40, %v628_v39 }
  0xe6   :  { %v631_v43 = vpop.f32.mrf.mxu0 }
  0xe7   :  { %v209_v44 = vpack.c.bf16 %v630_v41, %v630_v41 }
  0xe8   :  { %v632_v45 = vpop.f32.mrf.mxu0 }
  0xe9   :  { %v218_v46 = vadd.bf16 %v217_v42, %v209_v44 }
  0xeb   :  { %v219_v48 = vmax.bf16 %v768_v47, %v218_v46 }
  0xed   :  { %678 = vmatmul.mubr.bf16.vlgmr.msra.gmra.mxu1 %v219_v48 }
  0xee   :  { %717 = vmatprep.mubr.msk.bf16.mxu1 %vm767_vm0, %v766_v1  ;;  %702 = vmatpush3.bf16.msra.mxu1 %v758_v51 }
  0xef   :  { %703 = vmatprep.subr.bf16.mxu1 %v766_v1 }
  0xf2   :  { %704 = vmatpush3.bf16.msra.mxu1 %v759_v52 }
  0xf3   :  { %705 = vmatprep.subr.bf16.mxu1 %v766_v1 }
  0xf6   :  { %706 = vmatpush3.bf16.msra.mxu1 %v760_v53 }
  0xf7   :  { %707 = vmatprep.subr.bf16.mxu1 %v766_v1 }
  0xfa   :  { %708 = vmatpush3.bf16.msra.mxu1 %v761_v54 }
  0xfb   :  { %709 = vmatprep.subr.bf16.mxu1 %v766_v1 }
  0xfe   :  { %710 = vmatpush3.bf16.msra.mxu1 %v762_v55 }
  0xff   :  { %711 = vmatprep.subr.bf16.mxu1 %v766_v1 }
 0x102   :  { %712 = vmatpush3.bf16.msra.mxu1 %v763_v56 }
 0x103   :  { %713 = vmatprep.subr.bf16.mxu1 %v766_v1 }
 0x106   :  { %714 = vmatpush3.bf16.msra.mxu1 %v764_v4 }
 0x107   :  { %715 = vmatprep.subr.bf16.mxu1 %v766_v1  ;;  %v555_v1 = vld [vmem:[%s1001_s8] sm:$0x1] }
 0x108   :  { %v557_v16 = vpack.i.b16 %v555_v1, %v555_v1 }
 0x10a   :  { %716 = vmatpush3.bf16.msra.mxu1 %v765_v5  ;;  %v562_v17 = vrot.slane %v557_v16, %v935_v38 }
 0x1ad   :  { %v318_v60 = vpop.f32.mrf.mxu1 }
 0x1ae   :  { %v324_v61 = vpack.c.bf16 %v318_v60, %v318_v60 }
 0x1af   :  { %v679_v62 = vpop.f32.mrf.mxu1 }
 0x1b0   :  { %v333_v63 = vadd.bf16 %v332_v59, %v324_v61 }
 0x1b1   :  { %v321_v0 = vpop.f32.mrf.mxu1 }
 0x1b2   :  { %v334_v2 = vmax.bf16 %v768_v47, %v333_v63 }
 0x1b3   :  { %v680_v3 = vpop.f32.mrf.mxu1 }
 0x1b4   :  { %698 = vmatmul.mubr.bf16.vlgmr.msra.gmra.mxu0 %v334_v2 }
 0x274   :  { %v433_v9 = vpop.f32.mrf.mxu0 }
 0x275   :  { %v439_v10 = vpack.c.bf16 %v433_v9, %v433_v9 }
 0x276   :  { %v699_v11 = vpop.f32.mrf.mxu0 }
 0x277   :  { %v448_v12 = vadd.bf16 %v447_v8, %v439_v10 }
 0x278   :  { %v436_v13 = vpop.f32.mrf.mxu0 }
 0x279   :  { %v449_v14 = vmax.bf16 %v768_v47, %v448_v12 }
 0x27a   :  { %v700_v15 = vpop.f32.mrf.mxu0 }
 0x27b   :  { %718 = vmatmul.mubr.bf16.vlgmr.msra.gmra.mxu1 %v449_v14 }
 0x33b   :  { %v548_v18 = vpop.f32.mrf.mxu1 }
 0x33c   :  { %v554_v19 = vpack.c.bf16 %v548_v18, %v548_v18 }
 0x33d   :  { %v719_v20 = vpop.f32.mrf.mxu1 }
 0x33e   :  { %v563_v21 = vadd.bf16 %v562_v17, %v554_v19 }
 0x33f   :  { %v551_v22 = vpop.f32.mrf.mxu1 }
 0x340   :  { %v564_v23 = vunpack.c.l.bf16 %v563_v21 }
 0x341   :  { %v720_v24 = vpop.f32.mrf.mxu1 }
 0x342   :  { %565 = vst [vmem:[%s1002_s9] sm:$0xff] %v564_v23 }

</bundles_post_ra>
